<compile_context>
chip_gen: v5e
topology: v5e:2x2
jax: 0.10.0
libtpu: 0.0.40
codegen_flags: <defaults>
</compile_context>

<pallas_src>
import jax
import jax.numpy as jnp
import numpy as np
from jax.experimental import pallas as pl
from jax.experimental.pallas import tpu as pltpu


def _round_up(x, k):
    return ((x + k - 1) // k) * k


_BASIS_CACHE = {}


def _dft_half_basis(T, f_pad, dtype):
    """(2*f_pad, T) stacked [cos; -sin] half-spectrum DFT basis, cached per (T, f_pad, dtype)."""
    key = (T, f_pad, np.dtype(dtype).name)
    if key not in _BASIS_CACHE:
        ang = 2.0 * np.pi * np.outer(np.arange(f_pad), np.arange(T)) / T
        basis = np.concatenate([np.cos(ang), -np.sin(ang)], axis=0)
        _BASIS_CACHE[key] = jnp.asarray(basis, dtype=dtype)
    return _BASIS_CACHE[key]


def _dft_amp2_kernel(b_ref, x_ref, amp2_ref):
    # b_ref:   (2*Fpad, T) fused [cos; -sin] basis (grid-invariant, fetched once)
    # x_ref:   (T, tn)     lane-dense column tile of the flattened series
    # amp2_ref:(Fpad, tn)  squared half-spectrum magnitude
    f_pad = amp2_ref.shape[0]
    y = jnp.dot(b_ref[...], x_ref[...], preferred_element_type=jnp.float32)
    re = y[:f_pad]            # static sublane-aligned slices (f_pad % 8 == 0)
    im = y[f_pad:]
    amp2_ref[...] = re * re + im * im


def dft_amp2(xs, *, compute_dtype=jnp.float32, tile_n=512):
    """Squared FFT magnitude |FFT(xs, dim=1)|**2, shape (Ns, T, d).

    compute_dtype=jnp.bfloat16 reaches MXU peak on v6e/v7x and halves the
    resident basis footprint; the f32 default keeps amplitudes comparable to
    np.fft at small T (ordering for the downstream top-k is robust either way).
    """
    Ns, T, d = xs.shape
    N = Ns * d
    F = T // 2 + 1              # real input: only F frequency rows are unique
    f_pad = _round_up(F, 8)     # sublane-aligned frequency rows

    basis = _dft_half_basis(T, f_pad, compute_dtype)             # (2*f_pad, T)

    # Layout plumbing: (Ns, T, d) -> (T, Ns*d), lane-padded to a tile multiple
    # so every output store is an unmasked, lane-dense vst.
    x2 = jnp.transpose(xs.astype(compute_dtype), (1, 0, 2)).reshape(T, N)
    tn = min(tile_n, _round_up(N, 128))
    n_pad = _round_up(N, tn)
    if n_pad != N:
        x2 = jnp.pad(x2, ((0, 0), (0, n_pad - N)))
    grid = (n_pad // tn,)

    flops = 2 * (2 * f_pad) * T * n_pad + 3 * f_pad * n_pad
    bytes_accessed = (basis.size * basis.dtype.itemsize
                      + x2.size * x2.dtype.itemsize
                      + f_pad * n_pad * 4)

    out = pl.pallas_call(
        _dft_amp2_kernel,
        out_shape=jax.ShapeDtypeStruct((f_pad, n_pad), jnp.float32),
        grid=grid,
        in_specs=[
            # Grid-invariant fused basis: constant index_map -> not re-DMA'd
            # per column tile.
            pl.BlockSpec((2 * f_pad, T), lambda j: (0, 0)),
            pl.BlockSpec((T, tn), lambda j: (0, j)),
        ],
        out_specs=pl.BlockSpec((f_pad, tn), lambda j: (0, j)),
        compiler_params=pltpu.CompilerParams(dimension_semantics=("parallel",)),
        cost_estimate=pl.CostEstimate(flops=flops, transcendentals=0,
                                      bytes_accessed=bytes_accessed),
    )(basis, x2)
    # TODO(synk): for very large T, add a K-tiling ("arbitrary") reduction axis over
    # time chunks with an f32 VMEM accumulator so basis tiles fit v7x's 64 MiB VMEM;
    # unnecessary at this module's typical T (hundreds).

    amp2_half = out[:F, :N]                                      # (F, Ns*d)
    # Mirror the conjugate-symmetric half back to the full spectrum: |X[T-k]| = |X[k]|.
    mirror = amp2_half[1:T - F + 1][::-1]                        # (T - F, Ns*d)
    amp2_full = jnp.concatenate([amp2_half, mirror], axis=0)     # (T, Ns*d)
    return jnp.transpose(amp2_full.reshape(T, Ns, d), (1, 0, 2))  # (Ns, T, d)


def global_multi_periodicity_extractor(xs, m, *, compute_dtype=jnp.float32):
    """JAX/Pallas port of GlobalMultiPeriodicityExtractor.forward. xs: (Ns, T, d)."""
    Ns, T, d = xs.shape
    half = T // 2
    if m >= half:
        # PyTorch would fail the same way (repetitions[f] indexes out of range).
        raise ValueError("m must be < T//2")

    # Squared magnitude is ordering-equivalent to |FFT| for both top-k stages and
    # the histogram; avoids a per-element sqrt in the kernel.
    amp2 = dft_amp2(xs, compute_dtype=compute_dtype)             # (Ns, T, d)

    # TODO(synk): top-k has no clean Pallas TPU primitive; kept in plain-JAX glue.
    amp_t = jnp.swapaxes(amp2, 1, 2)                             # (Ns, d, T)
    a1, _ = jax.lax.top_k(amp_t, m)                              # first topk (values kept)
    _, f2 = jax.lax.top_k(a1, m)                                 # second topk over the m-axis (as in PyTorch)
    f = f2 + 1                                                   # (Ns, d, m), values in [1, m]

    # PyTorch: repetitions[f[ns, i, :]] += 1  — advanced-index assignment:
    # duplicate rows within one statement collapse to a single +1, and all d
    # columns are incremented. Reproduced with one-hot -> any over d -> sum.
    # f only takes values in [1, m], so one-hot over m bins (not T//2) and place
    # the counts at rows 1..m.
    onehot = (f[..., None] == jnp.arange(1, m + 1)[None, None, None, :])  # (Ns, d, m, m)
    present = jnp.any(onehot, axis=1)                                      # (Ns, m, m)
    counts = jnp.sum(present.astype(jnp.float32), axis=(0, 1))             # (m,)
    repetitions = jnp.zeros((half, d), dtype=jnp.float32)
    repetitions = repetitions.at[1:m + 1, :].set(
        jnp.broadcast_to(counts[:, None], (m, d)))
    return repetitions / (Ns * m)


def _reference_numpy(xs_np, m):
    """Faithful numpy re-implementation of the PyTorch forward for checking."""
    Ns, T, d = xs_np.shape
    a = np.abs(np.fft.fft(xs_np, axis=1))
    idx1 = np.argsort(-a, axis=1, kind="stable")[:, :m, :]
    a1 = np.take_along_axis(a, idx1, axis=1)
    idx2 = np.argsort(-a1, axis=1, kind="stable")[:, :m, :]
    f = idx2 + 1
    reps = np.zeros((T // 2, d), dtype=np.float32)
    for ns in range(Ns):
        for i in range(m):
            rows = np.unique(f[ns, i, :])                # duplicates collapse, like t[idx] += 1
            reps[rows, :] += 1.0
    return reps / (Ns * m)


if __name__ == "__main__":
    Ns, T, d, m = 8, 16, 8, 4                            # small shapes; m < T//2 as required
    key = jax.random.PRNGKey(0)
    xs = jax.random.normal(key, (Ns, T, d), dtype=jnp.float32)

    # Check the Pallas half-spectrum DFT kernel against numpy FFT.
    amp2 = jax.block_until_ready(dft_amp2(xs))
    amp_ref = np.abs(np.fft.fft(np.asarray(xs), axis=1))
    np.testing.assert_allclose(np.sqrt(np.asarray(amp2)), amp_ref, rtol=1e-3, atol=1e-3)

    # Full forward pass.
    reps = jax.block_until_ready(global_multi_periodicity_extractor(xs, m))
    reps_ref = _reference_numpy(np.asarray(xs, dtype=np.float64), m)
    np.testing.assert_allclose(np.asarray(reps), reps_ref, rtol=1e-5, atol=1e-5)

    print("KERNEL_OK")
</pallas_src>

<mosaic_0001>
module attributes {stable_mosaic.version = 11 : i64} {
  func.func @_dft_amp2_kernel(%arg0: i32, %arg1: memref<32x16xf32, #tpu.memory_space<vmem>>, %arg2: memref<16x128xf32, #tpu.memory_space<vmem>>, %arg3: memref<16x128xf32, #tpu.memory_space<vmem>>) attributes {dimension_semantics = [#tpu.dimension_semantics<parallel>], iteration_bounds = array<i64: 1>, scalar_prefetch = 0 : i64, scratch_operands = 0 : i64, tpu.core_type = #tpu.core_type<tc>, window_params = [{pipeline_mode = #tpu.pipeline_mode<synchronous>, transform_indices = @transform_0, window_bounds = array<i64: 32, 16>}, {transform_indices = @transform_1, window_bounds = array<i64: 16, 128>}, {transform_indices = @transform_2, window_bounds = array<i64: 16, 128>}]} {
    %c0 = arith.constant 0 : index
    %c0_0 = arith.constant 0 : index
    %0 = vector.load %arg1[%c0, %c0_0] : memref<32x16xf32, #tpu.memory_space<vmem>>, vector<32x16xf32>
    %c0_1 = arith.constant 0 : index
    %c0_2 = arith.constant 0 : index
    %1 = vector.load %arg2[%c0_1, %c0_2] : memref<16x128xf32, #tpu.memory_space<vmem>>, vector<16x128xf32>
    %cst = arith.constant dense<0.000000e+00> : vector<32x128xf32>
    %2 = tpu.matmul %0, %1, %cst {dimension_numbers = #tpu.dot_dimension_numbers<[1], [0], [0], [1], [0, 0, 1, 1], [], []>} : vector<32x16xf32>, vector<16x128xf32>, vector<32x128xf32> -> vector<32x128xf32>
    %3 = vector.extract_strided_slice %2 {offsets = [0, 0], sizes = [16, 128], strides = [1, 1]} : vector<32x128xf32> to vector<16x128xf32>
    %4 = vector.extract_strided_slice %2 {offsets = [16, 0], sizes = [16, 128], strides = [1, 1]} : vector<32x128xf32> to vector<16x128xf32>
    %5 = arith.mulf %3, %3 : vector<16x128xf32>
    %6 = arith.mulf %4, %4 : vector<16x128xf32>
    %7 = arith.addf %5, %6 : vector<16x128xf32>
    %c0_3 = arith.constant 0 : index
    %c0_4 = arith.constant 0 : index
    %8 = vector.load %arg3[%c0_3, %c0_4] : memref<16x128xf32, #tpu.memory_space<vmem>>, vector<16x128xf32>
    tpu.vector_store %arg3[%c0_3, %c0_4], %7 {strides = array<i32>} : memref<16x128xf32, #tpu.memory_space<vmem>>, vector<16x128xf32>,
    return
  }
  func.func @transform_0(%arg0: i32) -> (i32, i32) {
    %c0_i32 = arith.constant 0 : i32
    %c0_i32_0 = arith.constant 0 : i32
    %c0_i32_1 = arith.constant 0 : i32
    return %c0_i32, %c0_i32_0 : i32, i32
  }
  func.func @transform_1(%arg0: i32) -> (i32, i32) {
    %c0_i32 = arith.constant 0 : i32
    %c0_i32_0 = arith.constant 0 : i32
    return %c0_i32, %arg0 : i32, i32
  }
  func.func @transform_2(%arg0: i32) -> (i32, i32) {
    %c0_i32 = arith.constant 0 : i32
    %c0_i32_0 = arith.constant 0 : i32
    return %c0_i32, %arg0 : i32, i32
  }
}

</mosaic_0001>

<bundles_post_ra>
// kernel: tpu_custom_call.1
= control target key start
LH: loop header
LB: loop body
LE: loop exit
PB: predicated region body
PF: predicated region fallthrough
CT: control target
= control target key end

     0   :  { %vm18_vm0 = vcmask 130048   ;;  %s164_s0 = inlined_call_operand.vmem [shape: f32[32,16], index: 0, kind: input, shape index: {}]   ;;  %s165_s1 = inlined_call_operand.vmem [shape: f32[16,128], index: 1, kind: input, shape index: {}]   ;;  %s166_s2 = inlined_call_operand.hbm [shape: f32[16,128], index: 2, kind: output, shape index: {}]  }
   0x1   :  { %v17_v0 = vld [vmem:[%s165_s1 + $0x8] sm:$0xff]  ;;  %v16_v1 = vld [vmem:[%s165_s1] sm:$0xff]  ;;  %v14_v2 = vld [vmem:[%s164_s0 + $0x10] sm:$0xff] }
   0x2   :  { %91 = vmatpush.msra.mxu2 %v17_v0  ;;  %92 = vmatpush.msra.mxu3 %v17_v0  ;;  %v15_v3 = vld [vmem:[%s164_s0 + $0x18] sm:$0xff] }
   0x3   :  { %45 = vmatpush.msra.mxu0 %v17_v0  ;;  %90 = vmatpush.msra.mxu1 %v17_v0 }
   0x4   :  { %7 = vsyncpa [#allocation3], 0  ;;  %94 = vmatpush.msra.mxu2 %v16_v1  ;;  %95 = vmatpush.msra.mxu3 %v16_v1  ;;  %v12_v4 = vld [vmem:[%s164_s0] sm:$0xff]  ;;  %v13_v5 = vld [vmem:[%s164_s0 + $0x8] sm:$0xff]  ;;  %s125_s20 = smov [#allocation2]   ;;  %s74_s24 = sshll.u32 %s166_s2, 4  ;;  %s75_s24 = int_to_ptr.hbm [resolvable:$true] %s74_s24 }
   0x5   :  { %88 = vmatmul.msk.f32.vlgmr.msra.gmra.mxu2 %vm18_vm0, %v14_v2  ;;  %89 = vmatmul.msk.f32.vlgmr.msra.gmra.mxu3 %vm18_vm0, %v15_v3  ;;  %s72_s21 = sshll.u32 %s125_s20, 4  ;;  %s126_s0 = smov 128   ;;  %s73_s21 = int_to_ptr.vmem [resolvable:$true] %s72_s21 }
   0x6   :  { %46 = vmatpush.msra.mxu0 %v16_v1  ;;  %93 = vmatpush.msra.mxu1 %v16_v1  ;;  %s127_s25 = smov 8  }
   0x7   :  { %86 = vmatmul.msk.f32.vlgmr.msra.gmra.mxu0 %vm18_vm0, %v12_v4  ;;  %87 = vmatmul.msk.f32.vlgmr.msra.gmra.mxu1 %vm18_vm0, %v13_v5 }
  0x84   :  { %v48_v6 = vpop.f32.mrf.mxu0  ;;  %v51_v7 = vpop.f32.mrf.mxu1 }
  0x85   :  { %v60_v8 = vmul.f32 %v48_v6, %v48_v6  ;;  %v61_v9 = vmul.f32 %v51_v7, %v51_v7 }
  0x88   :  { %v54_v10 = vpop.f32.mrf.mxu2  ;;  %v57_v11 = vpop.f32.mrf.mxu3 }
  0x89   :  { %v62_v12 = vmul.f32 %v54_v10, %v54_v10  ;;  %v63_v13 = vmul.f32 %v57_v11, %v57_v11 }
  0x8b   :  { %v64_v14 = vadd.f32 %v62_v12, %v60_v8  ;;  %v65_v15 = vadd.f32 %v63_v13, %v61_v9 }
  0x8d   :  { %66 = vst [vmem:[#allocation2] sm:$0xff] %v64_v14 }
  0x8e   :  { %67 = vst [vmem:[#allocation2 + $0x8] sm:$0xff] %v65_v15 }
  0x8f   :  { %80 = dma.vmem_to_hbm [thread:$0]  %s73_s21, 256, %s75_s24, [#allocation3], %s126_s0, %s126_s0, %s127_s25  }
  0x90   :  { %123 = dma.done.wait [#allocation3], 256  }
  0x91   :  { %124 = vsyncadd [#allocation3], 4294967040 }
  0x92   :  { %85 = vsyncpa [#allocation3], 1 }

</bundles_post_ra>
